<compile_context>
chip_gen: v5e
topology: v5e:2x2
jax: 0.10.0
libtpu: 0.0.40
codegen_flags: <defaults>
</compile_context>

<pallas_src>
import functools

import jax
import jax.numpy as jnp
from jax import lax
from jax.experimental import pallas as pl
from jax.experimental.pallas import tpu as pltpu

_LANES = 128
_DEFAULT_ROWS_PER_TILE = 1024   # 1024x128 f32 = 512 KiB per coord-plane-less tile


def _round_up(x, m):
    return ((x + m - 1) // m) * m


def _core_split():
    """2-way partial-sum split only on multi-TensorCore chips (v4 megacore, v7x)."""
    try:
        kind = jax.devices()[0].device_kind.lower()
    except Exception:
        return 1
    return 2 if ("v4" in kind or "v7" in kind) else 1


def _layout(n_boxes, splits, max_rows_per_tile):
    rows_needed = pl.cdiv(n_boxes, _LANES)
    rows_per_tile = min(max_rows_per_tile,
                        _round_up(pl.cdiv(rows_needed, splits), 8))
    tiles_per_split = pl.cdiv(rows_needed, splits * rows_per_tile)
    rows_padded = splits * tiles_per_split * rows_per_tile
    return rows_per_tile, tiles_per_split, rows_padded


def _planarize(boxes, rows_padded):
    """(N, 4) XYXY -> (4, rows_padded, 128) coordinate-planar, zero padded."""
    n = boxes.shape[0]
    total = rows_padded * _LANES
    pad = total - n
    if pad:
        boxes = jnp.pad(boxes, ((0, pad), (0, 0)))
    return boxes.T.reshape(4, rows_padded, _LANES)


def _giou_planar(a_ref, b_ref, eps):
    """Per-lane GIoU loss from coordinate-planar (4, rows, 128) refs."""
    f32 = jnp.float32
    x1, y1, x2, y2 = (a_ref[i].astype(f32) for i in range(4))
    x1g, y1g, x2g, y2g = (b_ref[i].astype(f32) for i in range(4))

    xkis1 = jnp.maximum(x1, x1g)
    ykis1 = jnp.maximum(y1, y1g)
    xkis2 = jnp.minimum(x2, x2g)
    ykis2 = jnp.minimum(y2, y2g)
    iw = jnp.maximum(xkis2 - xkis1, 0.0)
    ih = jnp.maximum(ykis2 - ykis1, 0.0)
    intsctk = iw * ih
    unionk = (x2 - x1) * (y2 - y1) + (x2g - x1g) * (y2g - y1g) - intsctk
    iouk = intsctk / (unionk + eps)

    xc1 = jnp.minimum(x1, x1g)
    yc1 = jnp.minimum(y1, y1g)
    xc2 = jnp.maximum(x2, x2g)
    yc2 = jnp.maximum(y2, y2g)
    area_c = (xc2 - xc1) * (yc2 - yc1)
    miouk = iouk - (area_c - unionk) / (area_c + eps)
    return 1.0 - miouk


def _giou_none_kernel(a_ref, b_ref, o_ref, *, eps):
    o_ref[...] = _giou_planar(a_ref, b_ref, eps)


def _giou_reduce_kernel(a_ref, b_ref, out_ref, acc_ref, *,
                        rows_per_tile, tiles_per_core, n_valid, eps, scale):
    c = pl.program_id(0)
    t = pl.program_id(1)

    @pl.when(t == 0)
    def _init():
        acc_ref[...] = jnp.zeros_like(acc_ref)

    loss = _giou_planar(a_ref, b_ref, eps)

    tile_elems = rows_per_tile * _LANES
    start = (c * tiles_per_core + t) * tile_elems
    rem = n_valid - start  # number of still-valid boxes at this tile's start

    @pl.when(rem >= tile_elems)            # interior tile: pure VPU adds
    def _acc_full():
        acc_ref[...] += loss

    @pl.when(rem < tile_elems)             # boundary / fully-padded tile
    def _acc_masked():
        ids = (lax.broadcasted_iota(jnp.int32, (rows_per_tile, _LANES), 0) * _LANES
               + lax.broadcasted_iota(jnp.int32, (rows_per_tile, _LANES), 1))
        acc_ref[...] += jnp.where(ids < rem, loss, 0.0)

    @pl.when(t == tiles_per_core - 1)
    def _finalize():
        folded = acc_ref[...].reshape(rows_per_tile // 8, 8, _LANES).sum(axis=0)
        out_ref[...] = folded * scale


def _giou_ref(boxes1, boxes2, reduction="mean", eps=1e-7):
    """Pure-jnp reference mirroring the PyTorch GIOU module."""
    b1 = jnp.asarray(boxes1, jnp.float32)
    b2 = jnp.asarray(boxes2, jnp.float32)
    x1, y1, x2, y2 = b1[..., 0], b1[..., 1], b1[..., 2], b1[..., 3]
    x1g, y1g, x2g, y2g = b2[..., 0], b2[..., 1], b2[..., 2], b2[..., 3]
    xkis1 = jnp.maximum(x1, x1g)
    ykis1 = jnp.maximum(y1, y1g)
    xkis2 = jnp.minimum(x2, x2g)
    ykis2 = jnp.minimum(y2, y2g)
    mask = (ykis2 > ykis1) & (xkis2 > xkis1)
    intsctk = jnp.where(mask, (xkis2 - xkis1) * (ykis2 - ykis1), 0.0)
    unionk = (x2 - x1) * (y2 - y1) + (x2g - x1g) * (y2g - y1g) - intsctk
    iouk = intsctk / (unionk + eps)
    xc1 = jnp.minimum(x1, x1g)
    yc1 = jnp.minimum(y1, y1g)
    xc2 = jnp.maximum(x2, x2g)
    yc2 = jnp.maximum(y2, y2g)
    area_c = (xc2 - xc1) * (yc2 - yc1)
    miouk = iouk - (area_c - unionk) / (area_c + eps)
    loss = 1.0 - miouk
    if reduction == "mean":
        return loss.mean() if loss.size > 0 else 0.0 * loss.sum()
    if reduction == "sum":
        return loss.sum()
    return loss


def giou_loss(boxes1, boxes2, reduction="mean", eps=1e-7, *,
              max_rows_per_tile=_DEFAULT_ROWS_PER_TILE, fallback_below=0):
    """Generalized IoU loss for XYXY boxes of shape (N, 4) or (4,).

    reduction: 'none' | 'mean' | 'sum'.  `fallback_below` (in boxes) optionally
    routes tiny problems to plain XLA where launch overhead would dominate.
    """
    if reduction not in ("none", "mean", "sum"):
        raise ValueError(f"unsupported reduction: {reduction!r}")

    boxes1 = jnp.asarray(boxes1)
    boxes2 = jnp.asarray(boxes2)
    squeeze = boxes1.ndim == 1
    if squeeze:
        boxes1 = boxes1[None, :]
        boxes2 = boxes2[None, :]

    n = boxes1.shape[0]
    dtype = jnp.promote_types(boxes1.dtype, boxes2.dtype)
    if dtype not in (jnp.dtype(jnp.float32), jnp.dtype(jnp.bfloat16)):
        dtype = jnp.dtype(jnp.float32)
    boxes1 = boxes1.astype(dtype)
    boxes2 = boxes2.astype(dtype)

    if n == 0:
        if reduction == "none":
            return jnp.zeros((0,), jnp.float32)
        return jnp.zeros((), jnp.float32)

    if 0 < n < fallback_below:   # tiny workloads: let XLA fuse it upstream
        loss = _giou_ref(boxes1, boxes2, reduction=reduction, eps=eps)
        if reduction == "none" and squeeze:
            loss = loss[0]
        return loss

    max_rows_per_tile = max(8, _round_up(int(max_rows_per_tile), 8))

    if reduction == "none":
        rows_per_tile, num_tiles, rows_padded = _layout(n, 1, max_rows_per_tile)
        a_pl = _planarize(boxes1, rows_padded)
        b_pl = _planarize(boxes2, rows_padded)
        in_spec = pl.BlockSpec((4, rows_per_tile, _LANES), lambda t: (0, t, 0))
        out = pl.pallas_call(
            functools.partial(_giou_none_kernel, eps=float(eps)),
            out_shape=jax.ShapeDtypeStruct((rows_padded, _LANES), jnp.float32),
            grid_spec=pltpu.PrefetchScalarGridSpec(
                num_scalar_prefetch=0,
                grid=(num_tiles,),
                in_specs=[in_spec, in_spec],
                out_specs=pl.BlockSpec((rows_per_tile, _LANES),
                                       lambda t: (t, 0)),
            ),
            compiler_params=pltpu.CompilerParams(
                dimension_semantics=("parallel",)),
        )(a_pl, b_pl)
        loss = out.reshape(-1)[:n]          # contiguous slice (lane-dense out)
        return loss[0] if squeeze else loss

    # 'mean' / 'sum': in-kernel accumulation, chip-dependent core split.
    scale = (1.0 / n) if reduction == "mean" else 1.0
    splits = _core_split()
    rows_per_tile, tiles_per_core, rows_padded = _layout(
        n, splits, max_rows_per_tile)
    a_pl = _planarize(boxes1, rows_padded)
    b_pl = _planarize(boxes2, rows_padded)

    kernel = functools.partial(
        _giou_reduce_kernel,
        rows_per_tile=rows_per_tile,
        tiles_per_core=tiles_per_core,
        n_valid=n,
        eps=float(eps),
        scale=float(scale),
    )
    in_spec = pl.BlockSpec(
        (4, rows_per_tile, _LANES),
        lambda c, t: (0, c * tiles_per_core + t, 0))
    partials = pl.pallas_call(
        kernel,
        out_shape=jax.ShapeDtypeStruct((splits * 8, _LANES), jnp.float32),
        grid_spec=pltpu.PrefetchScalarGridSpec(
            num_scalar_prefetch=0,
            grid=(splits, tiles_per_core),
            in_specs=[in_spec, in_spec],
            out_specs=pl.BlockSpec((8, _LANES), lambda c, t: (c, 0)),
            scratch_shapes=[pltpu.VMEM((rows_per_tile, _LANES), jnp.float32)],
        ),
        compiler_params=pltpu.CompilerParams(
            dimension_semantics=("parallel", "arbitrary")),
    )(a_pl, b_pl)
    # Final (tiny) cross-lane reduce of the per-core partial sums in XLA.
    return jnp.sum(partials)


if __name__ == "__main__":
    key = jax.random.PRNGKey(0)

    def make_boxes(k, n):
        k1, k2 = jax.random.split(k)
        xy = jax.random.uniform(k1, (n, 2), minval=0.0, maxval=50.0)
        wh = jax.random.uniform(k2, (n, 2), minval=1.0, maxval=30.0)
        return jnp.concatenate([xy, xy + wh], axis=1).astype(jnp.float32)

    k1, k2, k3, k4 = jax.random.split(key, 4)

    # Small, non-multiple-of-128 N exercises padding + boundary masking.
    boxes1 = make_boxes(k1, 53)
    boxes2 = make_boxes(k2, 53)
    for red in ("mean", "sum", "none"):
        out = jax.block_until_ready(giou_loss(boxes1, boxes2, reduction=red))
        ref = jax.block_until_ready(_giou_ref(boxes1, boxes2, reduction=red))
        assert jnp.allclose(out, ref, rtol=1e-5, atol=1e-5), (red, out, ref)

    # Single-box (4,) input path.
    out1 = jax.block_until_ready(giou_loss(boxes1[0], boxes2[0], reduction="none"))
    ref1 = jax.block_until_ready(_giou_ref(boxes1[0], boxes2[0], reduction="none"))
    assert jnp.allclose(out1, ref1, rtol=1e-5, atol=1e-5), (out1, ref1)

    # Multi-tile accumulation path (several 'arbitrary' steps + boundary tile).
    b1 = make_boxes(k3, 5000)
    b2 = make_boxes(k4, 5000)
    out_mt = jax.block_until_ready(
        giou_loss(b1, b2, reduction="mean", max_rows_per_tile=8))
    ref_mt = jax.block_until_ready(_giou_ref(b1, b2, reduction="mean"))
    assert jnp.allclose(out_mt, ref_mt, rtol=1e-5, atol=1e-5), (out_mt, ref_mt)

    # bf16 inputs (halved HBM traffic; upcast to f32 inside the kernel).
    b1_bf = boxes1.astype(jnp.bfloat16)
    b2_bf = boxes2.astype(jnp.bfloat16)
    out_bf = jax.block_until_ready(giou_loss(b1_bf, b2_bf, reduction="mean"))
    ref_bf = jax.block_until_ready(
        _giou_ref(b1_bf.astype(jnp.float32), b2_bf.astype(jnp.float32),
                  reduction="mean"))
    assert jnp.allclose(out_bf, ref_bf, rtol=1e-4, atol=1e-4), (out_bf, ref_bf)

    print("KERNEL_OK")
</pallas_src>

<mosaic_0001>
module attributes {stable_mosaic.version = 11 : i64} {
  func.func @_giou_reduce_kernel(%arg0: i32, %arg1: i32, %arg2: memref<4x8x128xf32, #tpu.memory_space<vmem>>, %arg3: memref<4x8x128xf32, #tpu.memory_space<vmem>>, %arg4: memref<8x128xf32, #tpu.memory_space<vmem>>, %arg5: memref<8x128xf32, #tpu.memory_space<vmem>>) attributes {dimension_semantics = [#tpu.dimension_semantics<parallel>, #tpu.dimension_semantics<arbitrary>], iteration_bounds = array<i64: 1, 1>, scalar_prefetch = 0 : i64, scratch_operands = 1 : i64, tpu.core_type = #tpu.core_type<tc>, window_params = [{transform_indices = @transform_0, window_bounds = array<i64: 4, 8, 128>}, {transform_indices = @transform_1, window_bounds = array<i64: 4, 8, 128>}, {transform_indices = @transform_2, window_bounds = array<i64: 8, 128>}]} {
    %c0_i32 = arith.constant 0 : i32
    %0 = arith.cmpi eq, %arg1, %c0_i32 : i32
    %1 = arith.extui %0 : i1 to i32
    %c0_i32_0 = arith.constant 0 : i32
    %2 = arith.cmpi ne, %1, %c0_i32_0 : i32
    scf.if %2 {
      %cst_31 = arith.constant 0.000000e+00 : f32
      %68 = vector.broadcast %cst_31 : f32 to vector<8x128xf32>
      %c0_32 = arith.constant 0 : index
      %c0_33 = arith.constant 0 : index
      %69 = vector.load %arg5[%c0_32, %c0_33] : memref<8x128xf32, #tpu.memory_space<vmem>>, vector<8x128xf32>
      tpu.vector_store %arg5[%c0_32, %c0_33], %68 {strides = array<i32>} : memref<8x128xf32, #tpu.memory_space<vmem>>, vector<8x128xf32>,
    } else {
    }
    %c0 = arith.constant 0 : index
    %c0_1 = arith.constant 0 : index
    %c0_2 = arith.constant 0 : index
    %3 = vector.load %arg2[%c0, %c0_1, %c0_2] : memref<4x8x128xf32, #tpu.memory_space<vmem>>, vector<1x8x128xf32>
    %4 = vector.shape_cast %3 : vector<1x8x128xf32> to vector<8x128xf32>
    %c1 = arith.constant 1 : index
    %c0_3 = arith.constant 0 : index
    %c0_4 = arith.constant 0 : index
    %5 = vector.load %arg2[%c1, %c0_3, %c0_4] : memref<4x8x128xf32, #tpu.memory_space<vmem>>, vector<1x8x128xf32>
    %6 = vector.shape_cast %5 : vector<1x8x128xf32> to vector<8x128xf32>
    %c2 = arith.constant 2 : index
    %c0_5 = arith.constant 0 : index
    %c0_6 = arith.constant 0 : index
    %7 = vector.load %arg2[%c2, %c0_5, %c0_6] : memref<4x8x128xf32, #tpu.memory_space<vmem>>, vector<1x8x128xf32>
    %8 = vector.shape_cast %7 : vector<1x8x128xf32> to vector<8x128xf32>
    %c3 = arith.constant 3 : index
    %c0_7 = arith.constant 0 : index
    %c0_8 = arith.constant 0 : index
    %9 = vector.load %arg2[%c3, %c0_7, %c0_8] : memref<4x8x128xf32, #tpu.memory_space<vmem>>, vector<1x8x128xf32>
    %10 = vector.shape_cast %9 : vector<1x8x128xf32> to vector<8x128xf32>
    %c0_9 = arith.constant 0 : index
    %c0_10 = arith.constant 0 : index
    %c0_11 = arith.constant 0 : index
    %11 = vector.load %arg3[%c0_9, %c0_10, %c0_11] : memref<4x8x128xf32, #tpu.memory_space<vmem>>, vector<1x8x128xf32>
    %12 = vector.shape_cast %11 : vector<1x8x128xf32> to vector<8x128xf32>
    %c1_12 = arith.constant 1 : index
    %c0_13 = arith.constant 0 : index
    %c0_14 = arith.constant 0 : index
    %13 = vector.load %arg3[%c1_12, %c0_13, %c0_14] : memref<4x8x128xf32, #tpu.memory_space<vmem>>, vector<1x8x128xf32>
    %14 = vector.shape_cast %13 : vector<1x8x128xf32> to vector<8x128xf32>
    %c2_15 = arith.constant 2 : index
    %c0_16 = arith.constant 0 : index
    %c0_17 = arith.constant 0 : index
    %15 = vector.load %arg3[%c2_15, %c0_16, %c0_17] : memref<4x8x128xf32, #tpu.memory_space<vmem>>, vector<1x8x128xf32>
    %16 = vector.shape_cast %15 : vector<1x8x128xf32> to vector<8x128xf32>
    %c3_18 = arith.constant 3 : index
    %c0_19 = arith.constant 0 : index
    %c0_20 = arith.constant 0 : index
    %17 = vector.load %arg3[%c3_18, %c0_19, %c0_20] : memref<4x8x128xf32, #tpu.memory_space<vmem>>, vector<1x8x128xf32>
    %18 = vector.shape_cast %17 : vector<1x8x128xf32> to vector<8x128xf32>
    %19 = arith.maximumf %4, %12 : vector<8x128xf32>
    %20 = arith.maximumf %6, %14 : vector<8x128xf32>
    %21 = arith.minimumf %8, %16 : vector<8x128xf32>
    %22 = arith.minimumf %10, %18 : vector<8x128xf32>
    %23 = arith.subf %21, %19 : vector<8x128xf32>
    %cst = arith.constant 0.000000e+00 : f32
    %24 = vector.broadcast %cst : f32 to vector<8x128xf32>
    %25 = arith.maximumf %23, %24 : vector<8x128xf32>
    %26 = arith.subf %22, %20 : vector<8x128xf32>
    %cst_21 = arith.constant 0.000000e+00 : f32
    %27 = vector.broadcast %cst_21 : f32 to vector<8x128xf32>
    %28 = arith.maximumf %26, %27 : vector<8x128xf32>
    %29 = arith.mulf %25, %28 : vector<8x128xf32>
    %30 = arith.subf %8, %4 : vector<8x128xf32>
    %31 = arith.subf %10, %6 : vector<8x128xf32>
    %32 = arith.mulf %30, %31 : vector<8x128xf32>
    %33 = arith.subf %16, %12 : vector<8x128xf32>
    %34 = arith.subf %18, %14 : vector<8x128xf32>
    %35 = arith.mulf %33, %34 : vector<8x128xf32>
    %36 = arith.addf %32, %35 : vector<8x128xf32>
    %37 = arith.subf %36, %29 : vector<8x128xf32>
    %cst_22 = arith.constant 1.000000e-07 : f32
    %38 = vector.broadcast %cst_22 : f32 to vector<8x128xf32>
    %39 = arith.addf %37, %38 : vector<8x128xf32>
    %40 = arith.divf %29, %39 : vector<8x128xf32>
    %41 = arith.minimumf %4, %12 : vector<8x128xf32>
    %42 = arith.minimumf %6, %14 : vector<8x128xf32>
    %43 = arith.maximumf %8, %16 : vector<8x128xf32>
    %44 = arith.maximumf %10, %18 : vector<8x128xf32>
    %45 = arith.subf %43, %41 : vector<8x128xf32>
    %46 = arith.subf %44, %42 : vector<8x128xf32>
    %47 = arith.mulf %45, %46 : vector<8x128xf32>
    %48 = arith.subf %47, %37 : vector<8x128xf32>
    %cst_23 = arith.constant 1.000000e-07 : f32
    %49 = vector.broadcast %cst_23 : f32 to vector<8x128xf32>
    %50 = arith.addf %47, %49 : vector<8x128xf32>
    %51 = arith.divf %48, %50 : vector<8x128xf32>
    %52 = arith.subf %40, %51 : vector<8x128xf32>
    %cst_24 = arith.constant 1.000000e+00 : f32
    %53 = vector.broadcast %cst_24 : f32 to vector<8x128xf32>
    %54 = arith.subf %53, %52 : vector<8x128xf32>
    %c1_i32 = arith.constant 1 : i32
    %55 = arith.muli %arg0, %c1_i32 : i32
    %56 = arith.addi %55, %arg1 : i32
    %c1024_i32 = arith.constant 1024 : i32
    %57 = arith.muli %56, %c1024_i32 : i32
    %c53_i32 = arith.constant 53 : i32
    %58 = arith.subi %c53_i32, %57 : i32
    %c1024_i32_25 = arith.constant 1024 : i32
    %59 = arith.cmpi sge, %58, %c1024_i32_25 : i32
    %60 = arith.extui %59 : i1 to i32
    %c0_i32_26 = arith.constant 0 : i32
    %61 = arith.cmpi ne, %60, %c0_i32_26 : i32
    scf.if %61 {
      %c0_31 = arith.constant 0 : index
      %c0_32 = arith.constant 0 : index
      %68 = vector.load %arg5[%c0_31, %c0_32] : memref<8x128xf32, #tpu.memory_space<vmem>>, vector<8x128xf32>
      %69 = arith.addf %68, %54 : vector<8x128xf32>
      %c0_33 = arith.constant 0 : index
      %c0_34 = arith.constant 0 : index
      %70 = vector.load %arg5[%c0_33, %c0_34] : memref<8x128xf32, #tpu.memory_space<vmem>>, vector<8x128xf32>
      tpu.vector_store %arg5[%c0_33, %c0_34], %69 {strides = array<i32>} : memref<8x128xf32, #tpu.memory_space<vmem>>, vector<8x128xf32>,
    } else {
    }
    %c1024_i32_27 = arith.constant 1024 : i32
    %62 = arith.cmpi slt, %58, %c1024_i32_27 : i32
    %63 = arith.extui %62 : i1 to i32
    %c0_i32_28 = arith.constant 0 : i32
    %64 = arith.cmpi ne, %63, %c0_i32_28 : i32
    scf.if %64 {
      %68 = tpu.iota {dimensions = array<i32: 0>} : vector<8x128xi32>
      %c128_i32 = arith.constant 128 : i32
      %69 = vector.broadcast %c128_i32 : i32 to vector<8x128xi32>
      %70 = arith.muli %68, %69 : vector<8x128xi32>
      %71 = tpu.iota {dimensions = array<i32: 1>} : vector<8x128xi32>
      %72 = arith.addi %70, %71 : vector<8x128xi32>
      %c0_31 = arith.constant 0 : index
      %c0_32 = arith.constant 0 : index
      %73 = vector.load %arg5[%c0_31, %c0_32] : memref<8x128xf32, #tpu.memory_space<vmem>>, vector<8x128xf32>
      %74 = vector.broadcast %58 : i32 to vector<8x128xi32>
      %75 = arith.cmpi slt, %72, %74 : vector<8x128xi32>
      %cst_33 = arith.constant 0.000000e+00 : f32
      %76 = vector.broadcast %cst_33 : f32 to vector<8x128xf32>
      %77 = arith.select %75, %54, %76 : vector<8x128xi1>, vector<8x128xf32>
      %78 = arith.addf %73, %77 : vector<8x128xf32>
      %c0_34 = arith.constant 0 : index
      %c0_35 = arith.constant 0 : index
      %79 = vector.load %arg5[%c0_34, %c0_35] : memref<8x128xf32, #tpu.memory_space<vmem>>, vector<8x128xf32>
      tpu.vector_store %arg5[%c0_34, %c0_35], %78 {strides = array<i32>} : memref<8x128xf32, #tpu.memory_space<vmem>>, vector<8x128xf32>,
    } else {
    }
    %c0_i32_29 = arith.constant 0 : i32
    %65 = arith.cmpi eq, %arg1, %c0_i32_29 : i32
    %66 = arith.extui %65 : i1 to i32
    %c0_i32_30 = arith.constant 0 : i32
    %67 = arith.cmpi ne, %66, %c0_i32_30 : i32
    scf.if %67 {
      %c0_31 = arith.constant 0 : index
      %c0_32 = arith.constant 0 : index
      %68 = vector.load %arg5[%c0_31, %c0_32] : memref<8x128xf32, #tpu.memory_space<vmem>>, vector<8x128xf32>
      %69 = vector.shape_cast %68 : vector<8x128xf32> to vector<1x8x128xf32>
      %cst_33 = arith.constant dense<0.000000e+00> : vector<8x128xf32>
      %70 = vector.multi_reduction <add>, %69, %cst_33 [0] : vector<1x8x128xf32> to vector<8x128xf32>
      %cst_34 = arith.constant 0.0188679248 : f32
      %71 = vector.broadcast %cst_34 : f32 to vector<8x128xf32>
      %72 = arith.mulf %70, %71 : vector<8x128xf32>
      %c0_35 = arith.constant 0 : index
      %c0_36 = arith.constant 0 : index
      %73 = vector.load %arg4[%c0_35, %c0_36] : memref<8x128xf32, #tpu.memory_space<vmem>>, vector<8x128xf32>
      tpu.vector_store %arg4[%c0_35, %c0_36], %72 {strides = array<i32>} : memref<8x128xf32, #tpu.memory_space<vmem>>, vector<8x128xf32>,
    } else {
    }
    return
  }
  func.func @transform_0(%arg0: i32, %arg1: i32) -> (i32, i32, i32) {
    %c1_i32 = arith.constant 1 : i32
    %0 = arith.muli %arg0, %c1_i32 : i32
    %1 = arith.addi %0, %arg1 : i32
    %c0_i32 = arith.constant 0 : i32
    %c0_i32_0 = arith.constant 0 : i32
    %c0_i32_1 = arith.constant 0 : i32
    return %c0_i32, %1, %c0_i32_0 : i32, i32, i32
  }
  func.func @transform_1(%arg0: i32, %arg1: i32) -> (i32, i32, i32) {
    %c1_i32 = arith.constant 1 : i32
    %0 = arith.muli %arg0, %c1_i32 : i32
    %1 = arith.addi %0, %arg1 : i32
    %c0_i32 = arith.constant 0 : i32
    %c0_i32_0 = arith.constant 0 : i32
    %c0_i32_1 = arith.constant 0 : i32
    return %c0_i32, %1, %c0_i32_0 : i32, i32, i32
  }
  func.func @transform_2(%arg0: i32, %arg1: i32) -> (i32, i32) {
    %c0_i32 = arith.constant 0 : i32
    %c0_i32_0 = arith.constant 0 : i32
    return %arg0, %c0_i32 : i32, i32
  }
}

</mosaic_0001>

<bundles_post_ra>
// kernel: tpu_custom_call.1
= control target key start
LH: loop header
LB: loop body
LE: loop exit
PB: predicated region body
PF: predicated region fallthrough
CT: control target
= control target key end

     0   :  { %7 = vsyncpa [#allocation4], 0  ;;  %s297_s0 = inlined_call_operand.hbm [shape: f32[4,8,128], index: 0, kind: input, shape index: {}]   ;;  %s298_s1 = inlined_call_operand.hbm [shape: f32[4,8,128], index: 1, kind: input, shape index: {}]   ;;  %s299_s2 = inlined_call_operand.hbm [shape: f32[8,128], index: 2, kind: output, shape index: {}]  }
   0x1   :  { %8 = vsyncpa [#allocation7], 0 }
   0x2   :  { %9 = vsyncpa [#allocation5], 0  ;;  %s17_s11 = sshll.u32 %s297_s0, 4  ;;  %s268_s12 = smov [#allocation3]   ;;  %s18_s11 = int_to_ptr.hbm [resolvable:$true] %s17_s11 }
   0x3   :  { %s19_s13 = sshll.u32 %s268_s12, 4  ;;  %s33_s16 = sshll.u32 %s298_s1, 4  ;;  %s20_s13 = int_to_ptr.vmem [resolvable:$true] %s19_s13  ;;  %s34_s16 = int_to_ptr.hbm [resolvable:$true] %s33_s16 }
   0x4   :  { %s269_s17 = smov 128   ;;  %s270_s18 = smov 8  }
   0x5   :  { %25 = dma.hbm_to_vmem [thread:$0]  %s18_s11, 512, %s20_s13, [#allocation4], %s269_s17, %s269_s17, %s270_s18  }
   0x6   :  { %s271_s19 = smov [#allocation6]  }
   0x7   :  { %s35_s20 = sshll.u32 %s271_s19, 4  ;;  %s36_s20 = int_to_ptr.vmem [resolvable:$true] %s35_s20 }
   0x8   :  { %41 = dma.hbm_to_vmem [thread:$0]  %s34_s16, 512, %s36_s20, [#allocation7], %s269_s17, %s269_s17, %s270_s18  }
   0x9   :  { %262 = dma.done.wait [#allocation4], 512  }
   0xa   :  { %263 = vsyncadd [#allocation4], 4294966784 }
   0xb   :  { %264 = dma.done.wait [#allocation7], 512  }
   0xc   :  { %265 = vsyncadd [#allocation7], 4294966784  ;;  %v57_v0 = vld [vmem:[#allocation3] sm:$0xff]  ;;  %v59_v1 = vld [vmem:[#allocation3 + $0x8] sm:$0xff]  ;;  %v144_v37 = vlaneseq  ;;  %s272_s0 = smov [#allocation8]   ;;  %s170_s23 = sshll.u32 %s299_s2, 4  ;;  %s171_s23 = int_to_ptr.hbm [resolvable:$true] %s170_s23 }
   0xd   :  { %v61_v2 = vld [vmem:[#allocation3 + $0x10] sm:$0xff]  ;;  %v63_v3 = vld [vmem:[#allocation3 + $0x18] sm:$0xff]  ;;  %v64_v4 = vld [vmem:[#allocation6] sm:$0xff]  ;;  %s168_s1 = sshll.u32 %s272_s0, 4  ;;  %s169_s1 = int_to_ptr.vmem [resolvable:$true] %s168_s1 }
   0xe   :  { %v66_v5 = vld [vmem:[#allocation6 + $0x8] sm:$0xff]  ;;  %v80_v6 = vsub.f32 %v61_v2, %v57_v0  ;;  %v68_v7 = vld [vmem:[#allocation6 + $0x10] sm:$0xff]  ;;  %v70_v8 = vld [vmem:[#allocation6 + $0x18] sm:$0xff]  ;;  %v71_v9 = vmax.f32 %v57_v0, %v64_v4  ;;  %v81_v11 = vsub.f32 %v63_v3, %v59_v1  ;;  %v104_v12 = vmin.f32 %v57_v0, %v64_v4 }
   0xf   :  { %v72_v10 = vmax.f32 %v59_v1, %v66_v5  ;;  %v73_v13 = vmin.f32 %v61_v2, %v68_v7  ;;  %v74_v14 = vmin.f32 %v63_v3, %v70_v8  ;;  %v83_v15 = vsub.f32 %v68_v7, %v64_v4 }
  0x10   :  { %v84_v16 = vsub.f32 %v70_v8, %v66_v5  ;;  %v82_v17 = vmul.f32 %v81_v11, %v80_v6  ;;  %v105_v18 = vmin.f32 %v59_v1, %v66_v5  ;;  %v106_v19 = vmax.f32 %v61_v2, %v68_v7 }
  0x11   :  { %v107_v20 = vmax.f32 %v63_v3, %v70_v8  ;;  %v75_v21 = vsub.f32 %v73_v13, %v71_v9  ;;  %v77_v22 = vsub.f32 %v74_v14, %v72_v10  ;;  %v145_v45 = vshrl.u32 %v144_v37, 7 }
  0x12   :  { %v85_v23 = vmul.f32 %v84_v16, %v83_v15  ;;  %v108_v24 = vsub.f32 %v106_v19, %v104_v12  ;;  %v148_v54 = vand.u32 127, %v144_v37 }
  0x13   :  { %v109_v25 = vsub.f32 %v107_v20, %v105_v18  ;;  %v76_v26 = vmax.f32 %v75_v21, 0.0  ;;  %v78_v27 = vmax.f32 %v77_v22, 0.0  ;;  %v146_v53 = vmul.u32 128, %v145_v45 }
  0x14   :  { %v86_v28 = vadd.f32 %v85_v23, %v82_v17 }
  0x15   :  { %v110_v29 = vmul.f32 %v109_v25, %v108_v24  ;;  %v79_v30 = vmul.f32 %v78_v27, %v76_v26  ;;  %v149_v60 = vadd.s32 %v148_v54, %v146_v53 }
  0x17   :  { %v112_v31 = vadd.f32 1e-07, %v110_v29  ;;  %v87_v32 = vsub.f32 %v86_v28, %v79_v30  ;;  %vm152_vm8 = vcmp.lt.s32.totalorder %v149_v60, 53 }
  0x19   :  { %186 = vrcp.f32 %v112_v31  ;;  %v88_v33 = vadd.f32 1e-07, %v87_v32  ;;  %v124_v36 = vand.u32 2147483648, %v112_v31  ;;  %vm118_vm0 = vweird.f32 %v112_v31 }
  0x1a   :  { %v122_v40 = vand.u32 2147483647, %v112_v31  ;;  %v111_v50 = vsub.f32 %v110_v29, %v87_v32 }
  0x1b   :  { %188 = vrcp.f32 %v88_v33  ;;  %v100_v42 = vand.u32 2147483648, %v88_v33  ;;  %v125_v44 = vor.u32 1.1754944e-38, %v124_v36  ;;  %vm94_vm2 = vweird.f32 %v88_v33 }
  0x1c   :  { %v98_v47 = vand.u32 2147483647, %v88_v33  ;;  %vm123_vm5 = vcmp.eq.f32.partialorder %v122_v40, 8.507059e+37 }
  0x1d   :  { %v101_v51 = vor.u32 1.1754944e-38, %v100_v42 }
  0x1e   :  { %vm99_vm7 = vcmp.eq.f32.partialorder %v98_v47, 8.507059e+37 }
  0x1f   :  { %v187_v34 = vpop.eup %186 }
  0x20   :  { %v114_v35 = vmul.f32 %v187_v34, %v112_v31  ;;  %vm119_vm1 = vweird.f32 %v187_v34 }
  0x21   :  { %v189_v38 = vpop.eup %188  ;;  %vm120_vm4 = vmor %vm118_vm0, %vm119_vm1 }
  0x22   :  { %v115_v39 = vsub.f32 1.0, %v114_v35  ;;  %v90_v41 = vmul.f32 %v189_v38, %v88_v33  ;;  %vm95_vm3 = vweird.f32 %v189_v38 }
  0x23   :  { %vm96_vm6 = vmor %vm94_vm2, %vm95_vm3 }
  0x24   :  { %v116_v43 = vmul.f32 %v187_v34, %v115_v39  ;;  %v91_v46 = vsub.f32 1.0, %v90_v41 }
  0x26   :  { %v117_v48 = vadd.f32 %v187_v34, %v116_v43  ;;  %v92_v49 = vmul.f32 %v189_v38, %v91_v46 }
  0x28   :  { %v121_v52 = vsel %vm120_vm4, %v187_v34, %v117_v48  ;;  %v93_v55 = vadd.f32 %v189_v38, %v92_v49 }
  0x29   :  { %v126_v56 = vsel %vm123_vm5, %v125_v44, %v121_v52 }
  0x2a   :  { %v97_v57 = vsel %vm96_vm6, %v189_v38, %v93_v55  ;;  %v127_v58 = vmul.f32 %v126_v56, %v111_v50 }
  0x2b   :  { %v102_v59 = vsel %vm99_vm7, %v101_v51, %v97_v57 }
  0x2c   :  { %v103_v61 = vmul.f32 %v102_v59, %v79_v30 }
  0x2e   :  { %v128_v62 = vsub.f32 %v103_v61, %v127_v58 }
  0x30   :  { %v129_v63 = vsub.f32 1.0, %v128_v62 }
  0x32   :  { %v153_v0 = vsel %vm152_vm8, %v129_v63, 0.0 }
  0x33   :  { %v161_v1 = vmul.f32 0.018867925, %v153_v0 }
  0x35   :  { %162 = vst [vmem:[#allocation8] sm:$0xff] %v161_v1 }
  0x36   :  { %173 = dma.vmem_to_hbm [thread:$0]  %s169_s1, 128, %s171_s23, [#allocation5]  }
  0x37   :  { %266 = dma.done.wait [#allocation5], 128  }
  0x38   :  { %267 = vsyncadd [#allocation5], 4294967168 }
  0x39   :  { %178 = vsyncpa [#allocation4], 1 }
  0x3a   :  { %179 = vsyncpa [#allocation7], 1 }
  0x3b   :  { %180 = vsyncpa [#allocation5], 1 }

</bundles_post_ra>
